<compile_context>
chip_gen: v7x
topology: tpu7x:2x2x1
jax: 0.10.0
libtpu: 0.0.40
codegen_flags: <defaults>
</compile_context>

<pallas_src>
import functools

import jax
import jax.numpy as jnp
from jax.experimental import pallas as pl
from jax.experimental.pallas import tpu as pltpu


def _round_up(n, m):
    return pl.cdiv(n, m) * m


def link_predictor_kernel(x_i_ref, x_j_ref,
                          w1_ref, b1_ref,
                          w2_ref, b2_ref,
                          w3_ref, b3_ref,
                          out_ref, *, out_is_scalar):
    # Elementwise "link" feature: x = x_i * x_j  (VPU)
    x = x_i_ref[...] * x_j_ref[...]

    # Layer 1: Linear + ReLU (MXU matmul, f32 accumulation)
    h = jnp.dot(x, w1_ref[...], preferred_element_type=jnp.float32) + b1_ref[...]
    h = jnp.maximum(h, 0.0)
    # TODO(synk): F.dropout(training=True) not implemented; eval-mode forward (dropout = identity).

    # Layer 2: Linear + ReLU
    h = jnp.dot(h, w2_ref[...], preferred_element_type=jnp.float32) + b2_ref[...]
    h = jnp.maximum(h, 0.0)

    if out_is_scalar:
        # Final layer has 1 output column: a (tile, H) @ (H, 1) dot is an
        # almost-empty MXU op. Do VPU multiply + XLU lane reduce instead.
        # w3_ref arrives pre-transposed as (1, hidden).
        o = jnp.sum(h * w3_ref[...], axis=-1, keepdims=True) + b3_ref[...]
    else:
        o = jnp.dot(h, w3_ref[...], preferred_element_type=jnp.float32) + b3_ref[...]

    # sigmoid: exp goes to the EUP slot.
    out_ref[...] = jax.nn.sigmoid(o)


def link_predictor(x_i, x_j, params, *, tile_n=8192):
    """x_i, x_j: (N, in_channels) float32. params: dict of weights/biases."""
    n, in_ch = x_i.shape
    hidden = params["w1"].shape[1]
    out_ch = params["w3"].shape[1]
    out_is_scalar = (out_ch == 1)

    # Row tile: large to amortize per-grid-step overhead (~0.35 us) and keep
    # DMA saturated, but never larger than the (8-aligned) problem size.
    # tile_n=8192 f32 => 2 inputs x 2 buffers x 1 MiB = 4 MiB of input
    # buffering — comfortably inside default scoped VMEM on v5e/v6e/v7x.
    tile = min(tile_n, _round_up(n, 8))
    n_pad = _round_up(n, tile)
    if n_pad != n:
        pad = n_pad - n
        x_i = jnp.pad(x_i, ((0, pad), (0, 0)))
        x_j = jnp.pad(x_j, ((0, pad), (0, 0)))

    # Final-layer weight: pre-transpose to (1, hidden) for the VPU+reduce path.
    w3 = params["w3"].reshape(1, hidden) if out_is_scalar else params["w3"]

    row_in_spec = pl.BlockSpec((tile, in_ch), lambda i: (i, 0))
    row_out_spec = pl.BlockSpec((tile, out_ch), lambda i: (i, 0))

    def resident(arr):
        # Whole-array block, constant index_map -> DMA'd once, stays in VMEM.
        return pl.BlockSpec(arr.shape, lambda i: (0, 0))

    kernel = functools.partial(link_predictor_kernel, out_is_scalar=out_is_scalar)

    out = pl.pallas_call(
        kernel,
        out_shape=jax.ShapeDtypeStruct((n_pad, out_ch), jnp.float32),
        grid=(n_pad // tile,),
        in_specs=[row_in_spec, row_in_spec,
                  resident(params["w1"]), resident(params["b1"]),
                  resident(params["w2"]), resident(params["b2"]),
                  resident(w3), resident(params["b3"])],
        out_specs=row_out_spec,
        compiler_params=pltpu.CompilerParams(
            dimension_semantics=("parallel",)),
    )(x_i, x_j,
      params["w1"], params["b1"],
      params["w2"], params["b2"],
      w3, params["b3"])

    return out[:n]


def init_params(key, in_channels, hidden_channels, out_channels):
    """Deterministic synthetic init mimicking torch.nn.Linear default
    (uniform(-1/sqrt(fan_in), 1/sqrt(fan_in))). Weights stored (in, out)."""
    ks = jax.random.split(key, 6)

    def lin(kw, kb, fan_in, fan_out):
        bound = 1.0 / jnp.sqrt(jnp.float32(fan_in))
        w = jax.random.uniform(kw, (fan_in, fan_out), jnp.float32, -bound, bound)
        b = jax.random.uniform(kb, (1, fan_out), jnp.float32, -bound, bound)
        return w, b

    w1, b1 = lin(ks[0], ks[1], in_channels, hidden_channels)
    w2, b2 = lin(ks[2], ks[3], hidden_channels, hidden_channels)
    w3, b3 = lin(ks[4], ks[5], hidden_channels, out_channels)
    return {"w1": w1, "b1": b1, "w2": w2, "b2": b2, "w3": w3, "b3": b3}


def link_predictor_ref(x_i, x_j, p):
    """Pure-JAX reference of the PyTorch forward (eval mode)."""
    x = x_i * x_j
    h = jnp.maximum(x @ p["w1"] + p["b1"], 0.0)
    h = jnp.maximum(h @ p["w2"] + p["b2"], 0.0)
    return jax.nn.sigmoid(h @ p["w3"] + p["b3"])


if __name__ == "__main__":
    # Shapes consistent with LinkPredictor(in_channels=32, hidden=32,
    # out_channels=1, num_layers=3, dropout=0.5).
    in_channels = 32
    hidden_channels = 32
    out_channels = 1

    key = jax.random.PRNGKey(0)
    k_xi, k_xj, k_p = jax.random.split(key, 3)
    params = init_params(k_p, in_channels, hidden_channels, out_channels)

    # Test 1: tiny N (single tile, tile == padded N).
    N = 8
    x_i = jax.random.normal(k_xi, (N, in_channels), jnp.float32)
    x_j = jax.random.normal(k_xj, (N, in_channels), jnp.float32)
    out = jax.block_until_ready(link_predictor(x_i, x_j, params))
    ref = link_predictor_ref(x_i, x_j, params)
    assert out.shape == (N, out_channels), out.shape
    assert jnp.allclose(out, ref, atol=1e-5, rtol=1e-5), (out, ref)

    # Test 2: multi-tile grid with a partial last tile (exercises padding +
    # pipelined row tiling + result slicing). Small tile kept small on purpose
    # for the test; production default is tile_n=8192.
    N2 = 300
    x_i2 = jax.random.normal(jax.random.PRNGKey(1), (N2, in_channels), jnp.float32)
    x_j2 = jax.random.normal(jax.random.PRNGKey(2), (N2, in_channels), jnp.float32)
    out2 = jax.block_until_ready(link_predictor(x_i2, x_j2, params, tile_n=128))
    ref2 = link_predictor_ref(x_i2, x_j2, params)
    assert out2.shape == (N2, out_channels), out2.shape
    assert jnp.allclose(out2, ref2, atol=1e-5, rtol=1e-5)

    print("KERNEL_OK")
</pallas_src>

<mosaic_0001>
module attributes {stable_mosaic.version = 11 : i64} {
  func.func @link_predictor_kernel(%arg0: i32, %arg1: memref<8x32xf32, #tpu.memory_space<vmem>>, %arg2: memref<8x32xf32, #tpu.memory_space<vmem>>, %arg3: memref<32x32xf32, #tpu.memory_space<vmem>>, %arg4: memref<1x32xf32, #tpu.memory_space<vmem>>, %arg5: memref<32x32xf32, #tpu.memory_space<vmem>>, %arg6: memref<1x32xf32, #tpu.memory_space<vmem>>, %arg7: memref<1x32xf32, #tpu.memory_space<vmem>>, %arg8: memref<1x1xf32, #tpu.memory_space<vmem>>, %arg9: memref<8x1xf32, #tpu.memory_space<vmem>>) attributes {dimension_semantics = [#tpu.dimension_semantics<parallel>], iteration_bounds = array<i64: 1>, scalar_prefetch = 0 : i64, scratch_operands = 0 : i64, tpu.core_type = #tpu.core_type<tc>, window_params = [{transform_indices = @transform_0, window_bounds = array<i64: 8, 32>}, {transform_indices = @transform_1, window_bounds = array<i64: 8, 32>}, {pipeline_mode = #tpu.pipeline_mode<synchronous>, transform_indices = @transform_2, window_bounds = array<i64: 32, 32>}, {pipeline_mode = #tpu.pipeline_mode<synchronous>, transform_indices = @transform_3, window_bounds = array<i64: 1, 32>}, {pipeline_mode = #tpu.pipeline_mode<synchronous>, transform_indices = @transform_4, window_bounds = array<i64: 32, 32>}, {pipeline_mode = #tpu.pipeline_mode<synchronous>, transform_indices = @transform_5, window_bounds = array<i64: 1, 32>}, {pipeline_mode = #tpu.pipeline_mode<synchronous>, transform_indices = @transform_6, window_bounds = array<i64: 1, 32>}, {pipeline_mode = #tpu.pipeline_mode<synchronous>, transform_indices = @transform_7, window_bounds = array<i64: 1, 1>}, {transform_indices = @transform_8, window_bounds = array<i64: 8, 1>}]} {
    %c0 = arith.constant 0 : index
    %c0_0 = arith.constant 0 : index
    %0 = vector.load %arg1[%c0, %c0_0] : memref<8x32xf32, #tpu.memory_space<vmem>>, vector<8x32xf32>
    %c0_1 = arith.constant 0 : index
    %c0_2 = arith.constant 0 : index
    %1 = vector.load %arg2[%c0_1, %c0_2] : memref<8x32xf32, #tpu.memory_space<vmem>>, vector<8x32xf32>
    %2 = arith.mulf %0, %1 : vector<8x32xf32>
    %c0_3 = arith.constant 0 : index
    %c0_4 = arith.constant 0 : index
    %3 = vector.load %arg3[%c0_3, %c0_4] : memref<32x32xf32, #tpu.memory_space<vmem>>, vector<32x32xf32>
    %cst = arith.constant dense<0.000000e+00> : vector<8x32xf32>
    %4 = tpu.matmul %2, %3, %cst {dimension_numbers = #tpu.dot_dimension_numbers<[1], [0], [0], [1], [0, 0, 1, 1], [], []>} : vector<8x32xf32>, vector<32x32xf32>, vector<8x32xf32> -> vector<8x32xf32>
    %c0_5 = arith.constant 0 : index
    %c0_6 = arith.constant 0 : index
    %5 = vector.load %arg4[%c0_5, %c0_6] : memref<1x32xf32, #tpu.memory_space<vmem>>, vector<1x32xf32>
    %6 = vector.broadcast %5 : vector<1x32xf32> to vector<8x32xf32>
    %7 = arith.addf %4, %6 : vector<8x32xf32>
    %cst_7 = arith.constant 0.000000e+00 : f32
    %8 = vector.broadcast %cst_7 : f32 to vector<8x32xf32>
    %9 = arith.maximumf %7, %8 : vector<8x32xf32>
    %c0_8 = arith.constant 0 : index
    %c0_9 = arith.constant 0 : index
    %10 = vector.load %arg5[%c0_8, %c0_9] : memref<32x32xf32, #tpu.memory_space<vmem>>, vector<32x32xf32>
    %cst_10 = arith.constant dense<0.000000e+00> : vector<8x32xf32>
    %11 = tpu.matmul %9, %10, %cst_10 {dimension_numbers = #tpu.dot_dimension_numbers<[1], [0], [0], [1], [0, 0, 1, 1], [], []>} : vector<8x32xf32>, vector<32x32xf32>, vector<8x32xf32> -> vector<8x32xf32>
    %c0_11 = arith.constant 0 : index
    %c0_12 = arith.constant 0 : index
    %12 = vector.load %arg6[%c0_11, %c0_12] : memref<1x32xf32, #tpu.memory_space<vmem>>, vector<1x32xf32>
    %13 = vector.broadcast %12 : vector<1x32xf32> to vector<8x32xf32>
    %14 = arith.addf %11, %13 : vector<8x32xf32>
    %cst_13 = arith.constant 0.000000e+00 : f32
    %15 = vector.broadcast %cst_13 : f32 to vector<8x32xf32>
    %16 = arith.maximumf %14, %15 : vector<8x32xf32>
    %c0_14 = arith.constant 0 : index
    %c0_15 = arith.constant 0 : index
    %17 = vector.load %arg7[%c0_14, %c0_15] : memref<1x32xf32, #tpu.memory_space<vmem>>, vector<1x32xf32>
    %18 = vector.broadcast %17 : vector<1x32xf32> to vector<8x32xf32>
    %19 = arith.mulf %16, %18 : vector<8x32xf32>
    %cst_16 = arith.constant dense<0.000000e+00> : vector<8xf32>
    %20 = vector.multi_reduction <add>, %19, %cst_16 [1] : vector<8x32xf32> to vector<8xf32>
    %21 = vector.shape_cast %20 : vector<8xf32> to vector<8x1xf32>
    %c0_17 = arith.constant 0 : index
    %c0_18 = arith.constant 0 : index
    %22 = vector.load %arg8[%c0_17, %c0_18] : memref<1x1xf32, #tpu.memory_space<vmem>>, vector<1x1xf32>
    %23 = vector.broadcast %22 : vector<1x1xf32> to vector<8x1xf32>
    %24 = arith.addf %21, %23 : vector<8x1xf32>
    %25 = arith.negf %24 : vector<8x1xf32>
    %26 = math.exp %25 : vector<8x1xf32>
    %cst_19 = arith.constant 1.000000e+00 : f32
    %27 = vector.broadcast %cst_19 : f32 to vector<8x1xf32>
    %28 = arith.addf %27, %26 : vector<8x1xf32>
    %29 = arith.divf %27, %28 : vector<8x1xf32>
    %c0_20 = arith.constant 0 : index
    %c0_21 = arith.constant 0 : index
    %30 = vector.load %arg9[%c0_20, %c0_21] : memref<8x1xf32, #tpu.memory_space<vmem>>, vector<8x1xf32>
    tpu.vector_store %arg9[%c0_20, %c0_21], %29 {strides = array<i32>} : memref<8x1xf32, #tpu.memory_space<vmem>>, vector<8x1xf32>,
    return
  }
  func.func @transform_0(%arg0: i32) -> (i32, i32) {
    %c0_i32 = arith.constant 0 : i32
    %c0_i32_0 = arith.constant 0 : i32
    return %arg0, %c0_i32 : i32, i32
  }
  func.func @transform_1(%arg0: i32) -> (i32, i32) {
    %c0_i32 = arith.constant 0 : i32
    %c0_i32_0 = arith.constant 0 : i32
    return %arg0, %c0_i32 : i32, i32
  }
  func.func @transform_2(%arg0: i32) -> (i32, i32) {
    %c0_i32 = arith.constant 0 : i32
    %c0_i32_0 = arith.constant 0 : i32
    %c0_i32_1 = arith.constant 0 : i32
    return %c0_i32, %c0_i32_0 : i32, i32
  }
  func.func @transform_3(%arg0: i32) -> (i32, i32) {
    %c0_i32 = arith.constant 0 : i32
    %c0_i32_0 = arith.constant 0 : i32
    %c0_i32_1 = arith.constant 0 : i32
    return %c0_i32, %c0_i32_0 : i32, i32
  }
  func.func @transform_4(%arg0: i32) -> (i32, i32) {
    %c0_i32 = arith.constant 0 : i32
    %c0_i32_0 = arith.constant 0 : i32
    %c0_i32_1 = arith.constant 0 : i32
    return %c0_i32, %c0_i32_0 : i32, i32
  }
  func.func @transform_5(%arg0: i32) -> (i32, i32) {
    %c0_i32 = arith.constant 0 : i32
    %c0_i32_0 = arith.constant 0 : i32
    %c0_i32_1 = arith.constant 0 : i32
    return %c0_i32, %c0_i32_0 : i32, i32
  }
  func.func @transform_6(%arg0: i32) -> (i32, i32) {
    %c0_i32 = arith.constant 0 : i32
    %c0_i32_0 = arith.constant 0 : i32
    %c0_i32_1 = arith.constant 0 : i32
    return %c0_i32, %c0_i32_0 : i32, i32
  }
  func.func @transform_7(%arg0: i32) -> (i32, i32) {
    %c0_i32 = arith.constant 0 : i32
    %c0_i32_0 = arith.constant 0 : i32
    %c0_i32_1 = arith.constant 0 : i32
    return %c0_i32, %c0_i32_0 : i32, i32
  }
  func.func @transform_8(%arg0: i32) -> (i32, i32) {
    %c0_i32 = arith.constant 0 : i32
    %c0_i32_0 = arith.constant 0 : i32
    return %arg0, %c0_i32 : i32, i32
  }
}

</mosaic_0001>

<bundles_post_ra>
// kernel: tpu_custom_call.1
= control target key start
LH: loop header
LB: loop body
LE: loop exit
PB: predicated region body
PF: predicated region fallthrough
CT: control target
= control target key end

     0   :  { %s568_s0 = inlined_call_operand.hbm [shape: f32[8,32], index: 0, kind: input, shape index: {}]   ;;  %s569_s1 = inlined_call_operand.hbm [shape: f32[8,32], index: 1, kind: input, shape index: {}]   ;;  %s570_s2 = inlined_call_operand.hbm [shape: f32[32,32], index: 2, kind: input, shape index: {}]   ;;  %s571_s3 = inlined_call_operand.vmem [shape: f32[1,32], index: 3, kind: input, shape index: {}]   ;;  %s572_s4 = inlined_call_operand.hbm [shape: f32[32,32], index: 4, kind: input, shape index: {}]   ;;  %s573_s5 = inlined_call_operand.vmem [shape: f32[1,32], index: 5, kind: input, shape index: {}]   ;;  %s574_s6 = inlined_call_operand.vmem [shape: f32[1,32], index: 6, kind: input, shape index: {}]   ;;  %s575_s7 = inlined_call_operand.<no memory space> [shape: f32[1,1], index: 7, kind: input, shape index: {}]   ;;  %s576_s8 = inlined_call_operand.vmem [shape: f32[8,1], index: 8, kind: output, shape index: {}]  }
   0x1   :  { %v13_v0 = vstv %s575_s7 }
   0x2   :  { %14 = vst [vmem:[#allocation2] sm:$0x1] %v13_v0 }
   0x3   :  { %15 = vsyncpa [#allocation4], 0 }
   0x4   :  { %16 = vsyncpa [#allocation6], 0 }
   0x5   :  { %17 = vsyncpa [#allocation9], 0  ;;  %s448_s29 = smov [#allocation5]   ;;  %s449_s9 = smov [#allocation3]  }
   0x6   :  { %s34_s30 = sshll.u32 %s448_s29, 4  ;;  %s24_s10 = sshll.u32 %s449_s9, 4  ;;  %s35_s30 = int_to_ptr.vmem [resolvable:$true] %s34_s30  ;;  %s25_s10 = int_to_ptr.vmem [resolvable:$true] %s24_s10 }
   0x7   :  { %s354_s13 = scalar_lea.hbm %s569_s1, 128 }
   0x8   :  { %p355_p0 = scmp.ne.s32.totalorder %s569_s1, %s354_s13  ;;  %p358_p1 = scmp.lt.u32.totalorder %s354_s13, %s569_s1 }
   0xa   :  { %p360_p2 = pnand %p358_p1, %p355_p0 }
   0xc   :  { %363 = shalt.err (!%p360_p2)
}
   0xd   :  { %s364_s17 = scalar_lea.vmem %s35_s30, 128  ;;  %p369_p4 = scmp.lt.s32.totalorder %s35_s30, %s35_s30 }
   0xe   :  { %p365_p3 = scmp.ne.s32.totalorder %s35_s30, %s364_s17  ;;  %p370_p5 = scmp.lt.s32.totalorder %s364_s17, %s364_s17 }
  0x10   :  { %p371_p6 = por %p370_p5, %p369_p4 }
  0x12   :  { %p372_p7 = pnand %p371_p6, %p365_p3 }
  0x14   :  { %375 = shalt.err (!%p372_p7)
}
  0x15   :  { %37 = dma.hbm_to_vmem [thread:$0]  %s569_s1, 128, %s35_s30, [#allocation6]  }
  0x16   :  { %s376_s22 = scalar_lea.hbm %s568_s0, 128 }
  0x17   :  { %p377_p8 = scmp.ne.s32.totalorder %s568_s0, %s376_s22  ;;  %p380_p9 = scmp.lt.u32.totalorder %s376_s22, %s568_s0 }
  0x19   :  { %p382_p10 = pnand %p380_p9, %p377_p8 }
  0x1b   :  { %385 = shalt.err (!%p382_p10)
}
  0x1c   :  { %s386_s27 = scalar_lea.vmem %s25_s10, 128  ;;  %p391_p12 = scmp.lt.s32.totalorder %s25_s10, %s25_s10 }
  0x1d   :  { %p387_p11 = scmp.ne.s32.totalorder %s25_s10, %s386_s27  ;;  %p392_p13 = scmp.lt.s32.totalorder %s386_s27, %s386_s27 }
  0x1f   :  { %p393_p0 = por %p392_p13, %p391_p12 }
  0x21   :  { %p394_p1 = pnand %p393_p0, %p387_p11 }
  0x23   :  { %397 = shalt.err (!%p394_p1)
}
  0x24   :  { %27 = dma.hbm_to_vmem [thread:$0]  %s568_s0, 128, %s25_s10, [#allocation4]  }
  0x25   :  { %s450_s29 = smov [#allocation7]   ;;  %s398_s12 = scalar_lea.hbm %s570_s2, 512 }
  0x26   :  { %s43_s30 = sshll.u32 %s450_s29, 4  ;;  %p399_p2 = scmp.ne.s32.totalorder %s570_s2, %s398_s12  ;;  %s44_s30 = int_to_ptr.vmem [resolvable:$true] %s43_s30 }
  0x27   :  { %p402_p3 = scmp.lt.u32.totalorder %s398_s12, %s570_s2 }
  0x29   :  { %p404_p4 = pnand %p402_p3, %p399_p2 }
  0x2b   :  { %407 = shalt.err (!%p404_p4)
}
  0x2c   :  { %s408_s7 = scalar_lea.vmem %s44_s30, 512  ;;  %p413_p6 = scmp.lt.s32.totalorder %s44_s30, %s44_s30 }
  0x2d   :  { %p409_p5 = scmp.ne.s32.totalorder %s44_s30, %s408_s7  ;;  %p414_p7 = scmp.lt.s32.totalorder %s408_s7, %s408_s7 }
  0x2f   :  { %p415_p8 = por %p414_p7, %p413_p6 }
  0x31   :  { %p416_p9 = pnand %p415_p8, %p409_p5 }
  0x33   :  { %419 = shalt.err (!%p416_p9)
}
  0x34   :  { %s451_s0 = smov 128   ;;  %s452_s10 = smov 8  }
  0x35   :  { %49 = dma.hbm_to_vmem [thread:$0]  %s570_s2, 512, %s44_s30, [#allocation6], %s451_s0, %s451_s0, %s452_s10  }
  0x36   :  { %s453_s19 = smov [#allocation8]   ;;  %s420_s23 = scalar_lea.hbm %s572_s4, 512 }
  0x37   :  { %s57_s20 = sshll.u32 %s453_s19, 4  ;;  %p421_p10 = scmp.ne.s32.totalorder %s572_s4, %s420_s23  ;;  %s58_s20 = int_to_ptr.vmem [resolvable:$true] %s57_s20 }
  0x38   :  { %p424_p11 = scmp.lt.u32.totalorder %s420_s23, %s572_s4 }
  0x3a   :  { %p426_p12 = pnand %p424_p11, %p421_p10 }
  0x3c   :  { %429 = shalt.err (!%p426_p12)
}
  0x3d   :  { %s430_s1 = scalar_lea.vmem %s58_s20, 512  ;;  %p435_p0 = scmp.lt.s32.totalorder %s58_s20, %s58_s20 }
  0x3e   :  { %p431_p13 = scmp.ne.s32.totalorder %s58_s20, %s430_s1  ;;  %p436_p1 = scmp.lt.s32.totalorder %s430_s1, %s430_s1 }
  0x40   :  { %p437_p2 = por %p436_p1, %p435_p0 }
  0x42   :  { %p438_p3 = pnand %p437_p2, %p431_p13 }
  0x44   :  { %441 = shalt.err (!%p438_p3)
}
  0x45   :  { %63 = dma.hbm_to_vmem [thread:$0]  %s572_s4, 512, %s58_s20, [#allocation9], %s451_s0, %s451_s0, %s452_s10  }
  0x46   :  { %442 = dma.done.wait [#allocation4], 128  }
  0x47   :  { %443 = vsyncadd [#allocation4], 4294967168 }
  0x48   :  { %444 = dma.done.wait [#allocation6], 640  }
  0x49   :  { %445 = vsyncadd [#allocation6], 4294966656 }
  0x4a   :  { %446 = dma.done.wait [#allocation9], 512  }
  0x4b   :  { %447 = vsyncadd [#allocation9], 4294966784  ;;  %v454_v1 = vmov 0.0|0.0   ;;  %vm455_vm0 = vmmov 0   ;;  %v456_v2 = vmov 0.0   ;;  %v85_v3 = vld [vmem:[#allocation7] sm:$0xff] }
  0x4c   :  { %329 = vmatprep.subr.bf16.mxu0 %v454_v1  ;;  %315 = vmatprep.mubr.msk.f32.mxu0 %vm455_vm0, %v456_v2  ;;  %v86_v4 = vld [vmem:[#allocation7 + $0x8] sm:$0xff]  ;;  %v87_v5 = vld [vmem:[#allocation7 + $0x10] sm:$0xff]  ;;  %v88_v7 = vld [vmem:[#allocation7 + $0x18] sm:$0xff]  ;;  %vm96_vm1 = vcmask 261120   ;;  %vm281_vm2 = vcmask 7168  }
  0x4d   :  { %335 = vmatprep.subr.bf16.mxu1 %v454_v1  ;;  %326 = vmatprep.mubr.msk.f32.mxu1 %vm455_vm0, %v456_v2  ;;  %v330_v6 = vpack.c.bf16 %v86_v4, %v85_v3  ;;  %v171_v8 = vld [vmem:[#allocation8] sm:$0xff]  ;;  %v172_v9 = vld [vmem:[#allocation8 + $0x8] sm:$0xff]  ;;  %v333_v10 = vpack.c.bf16 %v88_v7, %v87_v5  ;;  %v82_v11 = vld [vmem:[#allocation3] sm:$0xff] }
  0x4e   :  { %v83_v12 = vld [vmem:[#allocation5] sm:$0xff]  ;;  %v336_v13 = vpack.c.bf16 %v172_v9, %v171_v8  ;;  %v173_v15 = vld [vmem:[#allocation8 + $0x10] sm:$0xff]  ;;  %v290_v18 = vld [vmem:[%s571_s3] ss:$0 sm:$0xff] }
  0x4f   :  { %331 = vmatpush3.bf16.msra.mxu0 %v330_v6  ;;  %v84_v14 = vmul.f32 %v83_v12, %v82_v11  ;;  %v174_v16 = vld [vmem:[#allocation8 + $0x18] sm:$0xff]  ;;  %v292_v23 = vld [vmem:[%s573_s5] ss:$0 sm:$0xff] }
  0x50   :  { %332 = vmatprep.subr.bf16.mxu0 %v454_v1  ;;  %337 = vmatpush3.bf16.msra.mxu1 %v336_v13  ;;  %v339_v17 = vpack.c.bf16 %v174_v16, %v173_v15  ;;  %v294_v27 = vld [vmem:[%s574_s6] ss:$0 sm:$0xff] }
  0x51   :  { %338 = vmatprep.subr.bf16.mxu1 %v454_v1  ;;  %v295_v31 = vld [vmem:[#allocation2] ss:$0 sm:$0xff] }
  0x53   :  { %334 = vmatpush3.bf16.msra.mxu0 %v333_v10 }
  0x54   :  { %340 = vmatpush3.bf16.msra.mxu1 %v339_v17 }
  0x56   :  { %316 = vmatmul.mubr.msk.f32.vlgmr.msra.gmra.mrb[0].mxu0 %vm96_vm1, %v84_v14 }
 0x129   :  { %v166_v19 = vpop.f32.mrb[0].mxu0 }
 0x12a   :  { %v167_v20 = vadd.f32 %v290_v18, %v166_v19  ;;  %v317_v21 = vpop.f32.mrb[1].mxu0 }
 0x12c   :  { %v170_v22 = vmax.f32 %v167_v20, 0.0 }
 0x12e   :  { %327 = vmatmul.mubr.msk.f32.vlgmr.msra.gmra.mrb[0].mxu1 %vm96_vm1, %v170_v22 }
 0x201   :  { %v251_v24 = vpop.f32.mrb[0].mxu1 }
 0x202   :  { %v252_v25 = vadd.f32 %v292_v23, %v251_v24  ;;  %v328_v26 = vpop.f32.mrb[1].mxu1 }
 0x204   :  { %v255_v28 = vmax.f32 %v252_v25, 0.0 }
 0x206   :  { %v263_v29 = vmul.f32 %v294_v27, %v255_v28 }
 0x208   :  { %v264_v30 = vsel %vm96_vm1, %v263_v29, 0.0 }
 0x209   :  { %265 = vadd.xlane.f32.xlu0 %v264_v30 }
 0x296   :  { %v266_v32 = vpop.xlane.xlu0 %265 }
 0x297   :  { %v274_v33 = vadd.f32 %v295_v31, %v266_v32 }
 0x299   :  { %v296_v34 = vmul.f32 -1.442695, %v274_v33 }
 0x29b   :  { %350 = vpow2.f32 %v296_v34 }
 0x2a5   :  { %v351_v35 = vpop.eup %350 }
 0x2a6   :  { %v278_v36 = vadd.f32 1.0, %v351_v35 }
 0x2a8   :  { %352 = vrcp.f32 %v278_v36 }
 0x2b2   :  { %v353_v37 = vpop.eup %352 }
 0x2b3   :  { %282 = vst.msk [vmem:[%s576_s8] sm:$0xff] %vm281_vm2, %v353_v37 }
 0x2b4   :  { %287 = vsyncpa [#allocation4], 1 }
 0x2b5   :  { %288 = vsyncpa [#allocation6], 1 }
 0x2b6   :  { %289 = vsyncpa [#allocation9], 1 }

</bundles_post_ra>
